<compile_context>
chip_gen: v7x
topology: tpu7x:2x2x1
jax: 0.10.0
libtpu: 0.0.40
codegen_flags: <defaults>
</compile_context>

<pallas_src>
import functools

import jax
import jax.numpy as jnp
from jax import lax
from jax.experimental import pallas as pl
from jax.experimental.pallas import tpu as pltpu


def _ce_kernel(logits_ref, tl_ref, w_ref,            # inputs
               loss_ref, wsum_ref,                    # outputs (per-row-tile partials)
               m_scr, l_scr,                          # scratch (online LSE state)
               *, n, c, row_tile, tile_c, mask_rows, mask_cols):
    i = pl.program_id(0)          # row-tile index  ("parallel")
    j = pl.program_id(1)          # class-tile index ("arbitrary", sequential)
    nj = pl.num_programs(1)

    @pl.when(j == 0)
    def _init():
        m_scr[...] = jnp.full(m_scr.shape, -jnp.inf, dtype=jnp.float32)
        l_scr[...] = jnp.zeros(l_scr.shape, dtype=jnp.float32)

    x = logits_ref[...].astype(jnp.float32)            # (row_tile, tile_c)

    if mask_cols:
        # (1, tile_c) iota/compare, broadcast into a single full-tile select.
        col_ids = j * tile_c + lax.broadcasted_iota(jnp.int32, (1, tile_c), 1)
        x = jnp.where(col_ids < c, x, -jnp.inf)        # -inf => ignored by max/exp

    # --- online log-sum-exp over class tiles ---
    m_prev = m_scr[...]
    m_new = jnp.maximum(m_prev, jnp.max(x, axis=-1, keepdims=True))
    alpha = jnp.exp(m_prev - m_new)                    # 0 at j==0 (exp(-inf - finite))
    l_scr[...] = alpha * l_scr[...] + jnp.sum(jnp.exp(x - m_new), axis=-1, keepdims=True)
    m_scr[...] = m_new

    @pl.when(j == nj - 1)
    def _finalize():
        lse = m_scr[...] + jnp.log(l_scr[...])         # (row_tile, 1)
        w_rows = w_ref[...]                            # (row_tile, 1); 0 for ignored rows
        loss_rows = w_rows * (lse - tl_ref[...])
        if mask_rows:
            # Out-of-range rows may hold garbage (even NaN/Inf); select (not multiply)
            # so nothing leaks into the partial sums.
            row_ids = i * row_tile + lax.broadcasted_iota(jnp.int32, (row_tile, 1), 0)
            row_valid = row_ids < n
            loss_rows = jnp.where(row_valid, loss_rows, 0.0)
            w_rows = jnp.where(row_valid, w_rows, 0.0)
        # lane-dense full-vreg store of the per-row-tile partial sums
        loss_ref[...] = jnp.broadcast_to(jnp.sum(loss_rows), loss_ref.shape)
        wsum_ref[...] = jnp.broadcast_to(jnp.sum(w_rows), wsum_ref.shape)


def _round_up(x, m):
    return ((x + m - 1) // m) * m


def _choose_tiles(n, c, itemsize, row_tile=None, tile_c=None):
    """Pick (row_tile, tile_c, vmem_limit) so the f32-expanded per-step working set
    (double-buffered native input + ~2 f32 full-tile intermediates) fits comfortably
    in VMEM on every TPU generation (v7x has only 64 MiB per TensorCore)."""
    try:
        vmem_cap = pltpu.get_tpu_info().vmem_capacity_bytes
    except Exception:
        vmem_cap = 64 << 20                            # assume the smallest (v7x)
    if vmem_cap >= (128 << 20):                        # v5e / v6e
        budget, vmem_limit = 48 << 20, 80 << 20
    else:                                              # v7x (64 MiB)
        budget, vmem_limit = 28 << 20, 48 << 20

    if row_tile is None:
        row_tile = min(256, _round_up(n, 8))
        # Guarantee >= 2 row tiles when N allows, so the "parallel" axis can be
        # split across v7x's two TensorCores (and v5e/v6e megacore scheduling).
        if n > 8 and pl.cdiv(n, row_tile) < 2:
            row_tile = _round_up(pl.cdiv(n, 2), 8)
        row_tile = max(8, row_tile)

    if tile_c is None:
        bytes_per_elem = 2 * itemsize + 8              # dbuf native + ~2x f32 temps
        max_elems = max(budget // bytes_per_elem, row_tile * 128)
        tile_c_max = max(128, (max_elems // row_tile) // 128 * 128)
        if _round_up(c, 128) <= tile_c_max:
            tile_c = c                                 # single, exact class tile
        else:
            tile_c = tile_c_max                        # multiple of 128
    return row_tile, tile_c, vmem_limit


def cross_entropy_loss(outputs, targets, *, ignore_index, weight=None,
                       row_tile=None, tile_c=None):
    """Pallas TPU nn.CrossEntropyLoss(weight, ignore_index), 'mean' reduction.
    outputs: (N, C) logits (any float dtype, streamed natively), targets: (N,) ints."""
    n, c = outputs.shape

    # ---- tiny O(N) gathers hoisted out of the kernel ----
    tgt = targets.astype(jnp.int32)
    valid = tgt != ignore_index
    safe_t = jnp.where(valid, tgt, 0)
    tgt_logit = jnp.take_along_axis(outputs, safe_t[:, None], axis=-1).astype(jnp.float32)
    if weight is None:
        w_rows = valid.astype(jnp.float32)[:, None]
    else:
        w_rows = jnp.where(valid, weight.astype(jnp.float32)[safe_t], 0.0)[:, None]

    itemsize = jnp.dtype(outputs.dtype).itemsize
    row_tile, tile_c, vmem_limit = _choose_tiles(n, c, itemsize, row_tile, tile_c)
    nt_r = pl.cdiv(n, row_tile)
    nt_c = pl.cdiv(c, tile_c)
    mask_rows = (nt_r * row_tile != n)
    mask_cols = (nt_c * tile_c != c)

    kernel = functools.partial(
        _ce_kernel, n=n, c=c, row_tile=row_tile, tile_c=tile_c,
        mask_rows=mask_rows, mask_cols=mask_cols)

    loss_parts, w_parts = pl.pallas_call(
        kernel,
        out_shape=(jax.ShapeDtypeStruct((nt_r, 8, 128), jnp.float32),
                   jax.ShapeDtypeStruct((nt_r, 8, 128), jnp.float32)),
        grid_spec=pltpu.PrefetchScalarGridSpec(
            num_scalar_prefetch=0,
            grid=(nt_r, nt_c),
            in_specs=[
                pl.BlockSpec((row_tile, tile_c), lambda i, j: (i, j)),   # logits (native dtype)
                pl.BlockSpec((row_tile, 1), lambda i, j: (i, 0)),        # target logits (f32)
                pl.BlockSpec((row_tile, 1), lambda i, j: (i, 0)),        # per-row weights (f32)
            ],
            out_specs=[
                pl.BlockSpec((1, 8, 128), lambda i, j: (i, 0, 0)),
                pl.BlockSpec((1, 8, 128), lambda i, j: (i, 0, 0)),
            ],
            scratch_shapes=[pltpu.VMEM((row_tile, 1), jnp.float32)] * 2,
        ),
        compiler_params=pltpu.CompilerParams(
            dimension_semantics=("parallel", "arbitrary"),
            vmem_limit_bytes=vmem_limit),
    )(outputs, tgt_logit, w_rows)

    loss_sum = jnp.sum(loss_parts[:, 0, 0])
    w_sum = jnp.sum(w_parts[:, 0, 0])
    return loss_sum / w_sum


def _reference_ce(outputs, targets, *, ignore_index, weight):
    """Pure-JAX reference matching torch.nn.CrossEntropyLoss semantics ('mean')."""
    x = outputs.astype(jnp.float32)
    lse = jax.scipy.special.logsumexp(x, axis=-1)
    safe_t = jnp.where(targets == ignore_index, 0, targets)
    tgt_logit = jnp.take_along_axis(x, safe_t[:, None], axis=-1)[:, 0]
    w_row = weight[safe_t]
    w_row = jnp.where(targets == ignore_index, 0.0, w_row)
    return jnp.sum(w_row * (lse - tgt_logit)) / jnp.sum(w_row)


if __name__ == "__main__":
    IGNORE_INDEX = -100
    key = jax.random.PRNGKey(0)

    # ---- Test A: small f32 case with class weights (single exact class tile) ----
    N, C = 8, 32
    k1, k2, k3, k4, k5, k6 = jax.random.split(key, 6)
    outputs = jax.random.normal(k1, (N, C), dtype=jnp.float32)
    targets = jax.random.randint(k2, (N,), 0, C, dtype=jnp.int32)
    targets = targets.at[3].set(IGNORE_INDEX)           # exercise ignore_index
    weight = jnp.linspace(0.5, 1.5, C, dtype=jnp.float32)

    loss = cross_entropy_loss(outputs, targets, ignore_index=IGNORE_INDEX,
                              weight=weight)
    loss = jax.block_until_ready(loss)
    ref = _reference_ce(outputs, targets, ignore_index=IGNORE_INDEX, weight=weight)
    assert jnp.allclose(loss, ref, rtol=1e-5, atol=1e-5), (loss, ref)

    # ---- Test B: bf16 logits, weight=None, forced multi-tile grid to exercise
    #      row masking, class-axis online logsumexp, and column masking ----
    N2, C2 = 120, 200
    out2 = jax.random.normal(k3, (N2, C2), dtype=jnp.float32).astype(jnp.bfloat16)
    tgt2 = jax.random.randint(k4, (N2,), 0, C2, dtype=jnp.int32)
    tgt2 = tgt2.at[0].set(IGNORE_INDEX).at[77].set(IGNORE_INDEX)

    loss2 = cross_entropy_loss(out2, tgt2, ignore_index=IGNORE_INDEX, weight=None,
                               row_tile=32, tile_c=128)   # grid = (4 row tiles, 2 class tiles)
    loss2 = jax.block_until_ready(loss2)
    ref2 = _reference_ce(out2.astype(jnp.float32), tgt2,
                         ignore_index=IGNORE_INDEX,
                         weight=jnp.ones((C2,), jnp.float32))
    assert jnp.allclose(loss2, ref2, rtol=1e-4, atol=1e-4), (loss2, ref2)

    # ---- Test C: default tile chooser (auto row split into >=2 tiles, exact
    #      class tile, edge row masking) with class weights ----
    N3, C3 = 300, 1000
    out3 = jax.random.normal(k5, (N3, C3), dtype=jnp.float32)
    tgt3 = jax.random.randint(k6, (N3,), 0, C3, dtype=jnp.int32)
    tgt3 = tgt3.at[10].set(IGNORE_INDEX).at[299].set(IGNORE_INDEX)
    weight3 = jnp.linspace(0.25, 2.0, C3, dtype=jnp.float32)

    loss3 = cross_entropy_loss(out3, tgt3, ignore_index=IGNORE_INDEX, weight=weight3)
    loss3 = jax.block_until_ready(loss3)
    ref3 = _reference_ce(out3, tgt3, ignore_index=IGNORE_INDEX, weight=weight3)
    assert jnp.allclose(loss3, ref3, rtol=1e-5, atol=1e-5), (loss3, ref3)

    print("KERNEL_OK")
</pallas_src>

<mosaic_0001>
module attributes {stable_mosaic.version = 11 : i64} {
  func.func @_ce_kernel(%arg0: i32, %arg1: i32, %arg2: memref<8x32xf32, #tpu.memory_space<vmem>>, %arg3: memref<8x1xf32, #tpu.memory_space<vmem>>, %arg4: memref<8x1xf32, #tpu.memory_space<vmem>>, %arg5: memref<1x8x128xf32, #tpu.memory_space<vmem>>, %arg6: memref<1x8x128xf32, #tpu.memory_space<vmem>>, %arg7: memref<8x1xf32, #tpu.memory_space<vmem>>, %arg8: memref<8x1xf32, #tpu.memory_space<vmem>>) attributes {dimension_semantics = [#tpu.dimension_semantics<parallel>, #tpu.dimension_semantics<arbitrary>], iteration_bounds = array<i64: 1, 1>, scalar_prefetch = 0 : i64, scratch_operands = 2 : i64, tpu.core_type = #tpu.core_type<tc>, window_params = [{transform_indices = @transform_0, window_bounds = array<i64: 8, 32>}, {transform_indices = @transform_1, window_bounds = array<i64: 8, 1>}, {transform_indices = @transform_2, window_bounds = array<i64: 8, 1>}, {transform_indices = @transform_3, window_bounds = array<i64: 1, 8, 128>}, {transform_indices = @transform_4, window_bounds = array<i64: 1, 8, 128>}]} {
    %c0_i32 = arith.constant 0 : i32
    %0 = arith.cmpi eq, %arg1, %c0_i32 : i32
    %1 = arith.extui %0 : i1 to i32
    %c0_i32_0 = arith.constant 0 : i32
    %2 = arith.cmpi ne, %1, %c0_i32_0 : i32
    scf.if %2 {
      %cst_13 = arith.constant 0xFF800000 : f32
      %23 = vector.broadcast %cst_13 : f32 to vector<8x1xf32>
      %c0_14 = arith.constant 0 : index
      %c0_15 = arith.constant 0 : index
      %24 = vector.load %arg7[%c0_14, %c0_15] : memref<8x1xf32, #tpu.memory_space<vmem>>, vector<8x1xf32>
      tpu.vector_store %arg7[%c0_14, %c0_15], %23 {strides = array<i32>} : memref<8x1xf32, #tpu.memory_space<vmem>>, vector<8x1xf32>,
      %cst_16 = arith.constant 0.000000e+00 : f32
      %25 = vector.broadcast %cst_16 : f32 to vector<8x1xf32>
      %c0_17 = arith.constant 0 : index
      %c0_18 = arith.constant 0 : index
      %26 = vector.load %arg8[%c0_17, %c0_18] : memref<8x1xf32, #tpu.memory_space<vmem>>, vector<8x1xf32>
      tpu.vector_store %arg8[%c0_17, %c0_18], %25 {strides = array<i32>} : memref<8x1xf32, #tpu.memory_space<vmem>>, vector<8x1xf32>,
    } else {
    }
    %c0 = arith.constant 0 : index
    %c0_1 = arith.constant 0 : index
    %3 = vector.load %arg2[%c0, %c0_1] : memref<8x32xf32, #tpu.memory_space<vmem>>, vector<8x32xf32>
    %c0_2 = arith.constant 0 : index
    %c0_3 = arith.constant 0 : index
    %4 = vector.load %arg7[%c0_2, %c0_3] : memref<8x1xf32, #tpu.memory_space<vmem>>, vector<8x1xf32>
    %cst = arith.constant dense<0xFF800000> : vector<8xf32>
    %5 = vector.multi_reduction <maximumf>, %3, %cst [1] : vector<8x32xf32> to vector<8xf32>
    %6 = vector.shape_cast %5 : vector<8xf32> to vector<8x1xf32>
    %7 = arith.maximumf %4, %6 : vector<8x1xf32>
    %8 = arith.subf %4, %7 : vector<8x1xf32>
    %9 = math.exp %8 : vector<8x1xf32>
    %c0_4 = arith.constant 0 : index
    %c0_5 = arith.constant 0 : index
    %10 = vector.load %arg8[%c0_4, %c0_5] : memref<8x1xf32, #tpu.memory_space<vmem>>, vector<8x1xf32>
    %11 = arith.mulf %9, %10 : vector<8x1xf32>
    %12 = vector.broadcast %7 : vector<8x1xf32> to vector<8x32xf32>
    %13 = arith.subf %3, %12 : vector<8x32xf32>
    %14 = math.exp %13 : vector<8x32xf32>
    %cst_6 = arith.constant dense<0.000000e+00> : vector<8xf32>
    %15 = vector.multi_reduction <add>, %14, %cst_6 [1] : vector<8x32xf32> to vector<8xf32>
    %16 = vector.shape_cast %15 : vector<8xf32> to vector<8x1xf32>
    %17 = arith.addf %11, %16 : vector<8x1xf32>
    %c0_7 = arith.constant 0 : index
    %c0_8 = arith.constant 0 : index
    %18 = vector.load %arg8[%c0_7, %c0_8] : memref<8x1xf32, #tpu.memory_space<vmem>>, vector<8x1xf32>
    tpu.vector_store %arg8[%c0_7, %c0_8], %17 {strides = array<i32>} : memref<8x1xf32, #tpu.memory_space<vmem>>, vector<8x1xf32>,
    %c0_9 = arith.constant 0 : index
    %c0_10 = arith.constant 0 : index
    %19 = vector.load %arg7[%c0_9, %c0_10] : memref<8x1xf32, #tpu.memory_space<vmem>>, vector<8x1xf32>
    tpu.vector_store %arg7[%c0_9, %c0_10], %7 {strides = array<i32>} : memref<8x1xf32, #tpu.memory_space<vmem>>, vector<8x1xf32>,
    %c0_i32_11 = arith.constant 0 : i32
    %20 = arith.cmpi eq, %arg1, %c0_i32_11 : i32
    %21 = arith.extui %20 : i1 to i32
    %c0_i32_12 = arith.constant 0 : i32
    %22 = arith.cmpi ne, %21, %c0_i32_12 : i32
    scf.if %22 {
      %c0_13 = arith.constant 0 : index
      %c0_14 = arith.constant 0 : index
      %23 = vector.load %arg7[%c0_13, %c0_14] : memref<8x1xf32, #tpu.memory_space<vmem>>, vector<8x1xf32>
      %c0_15 = arith.constant 0 : index
      %c0_16 = arith.constant 0 : index
      %24 = vector.load %arg8[%c0_15, %c0_16] : memref<8x1xf32, #tpu.memory_space<vmem>>, vector<8x1xf32>
      %25 = math.log %24 : vector<8x1xf32>
      %26 = arith.addf %23, %25 : vector<8x1xf32>
      %c0_17 = arith.constant 0 : index
      %c0_18 = arith.constant 0 : index
      %27 = vector.load %arg4[%c0_17, %c0_18] : memref<8x1xf32, #tpu.memory_space<vmem>>, vector<8x1xf32>
      %c0_19 = arith.constant 0 : index
      %c0_20 = arith.constant 0 : index
      %28 = vector.load %arg3[%c0_19, %c0_20] : memref<8x1xf32, #tpu.memory_space<vmem>>, vector<8x1xf32>
      %29 = arith.subf %26, %28 : vector<8x1xf32>
      %30 = arith.mulf %27, %29 : vector<8x1xf32>
      %31 = vector.shape_cast %30 : vector<8x1xf32> to vector<1x8x1xf32>
      %cst_21 = arith.constant dense<0.000000e+00> : vector<1xf32>
      %32 = vector.multi_reduction <add>, %31, %cst_21 [1, 2] : vector<1x8x1xf32> to vector<1xf32>
      %33 = vector.shape_cast %32 : vector<1xf32> to vector<1x1x1xf32>
      %34 = vector.extract %33[0, 0, 0] : f32 from vector<1x1x1xf32>
      %35 = vector.broadcast %34 : f32 to vector<1x8x128xf32>
      %c0_22 = arith.constant 0 : index
      %c0_23 = arith.constant 0 : index
      %c0_24 = arith.constant 0 : index
      %36 = vector.load %arg5[%c0_22, %c0_23, %c0_24] : memref<1x8x128xf32, #tpu.memory_space<vmem>>, vector<1x8x128xf32>
      tpu.vector_store %arg5[%c0_22, %c0_23, %c0_24], %35 {strides = array<i32>} : memref<1x8x128xf32, #tpu.memory_space<vmem>>, vector<1x8x128xf32>,
      %37 = vector.shape_cast %27 : vector<8x1xf32> to vector<1x8x1xf32>
      %cst_25 = arith.constant dense<0.000000e+00> : vector<1xf32>
      %38 = vector.multi_reduction <add>, %37, %cst_25 [1, 2] : vector<1x8x1xf32> to vector<1xf32>
      %39 = vector.shape_cast %38 : vector<1xf32> to vector<1x1x1xf32>
      %40 = vector.extract %39[0, 0, 0] : f32 from vector<1x1x1xf32>
      %41 = vector.broadcast %40 : f32 to vector<1x8x128xf32>
      %c0_26 = arith.constant 0 : index
      %c0_27 = arith.constant 0 : index
      %c0_28 = arith.constant 0 : index
      %42 = vector.load %arg6[%c0_26, %c0_27, %c0_28] : memref<1x8x128xf32, #tpu.memory_space<vmem>>, vector<1x8x128xf32>
      tpu.vector_store %arg6[%c0_26, %c0_27, %c0_28], %41 {strides = array<i32>} : memref<1x8x128xf32, #tpu.memory_space<vmem>>, vector<1x8x128xf32>,
    } else {
    }
    return
  }
  func.func @transform_0(%arg0: i32, %arg1: i32) -> (i32, i32) {
    %c0_i32 = arith.constant 0 : i32
    return %arg0, %arg1 : i32, i32
  }
  func.func @transform_1(%arg0: i32, %arg1: i32) -> (i32, i32) {
    %c0_i32 = arith.constant 0 : i32
    %c0_i32_0 = arith.constant 0 : i32
    return %arg0, %c0_i32 : i32, i32
  }
  func.func @transform_2(%arg0: i32, %arg1: i32) -> (i32, i32) {
    %c0_i32 = arith.constant 0 : i32
    %c0_i32_0 = arith.constant 0 : i32
    return %arg0, %c0_i32 : i32, i32
  }
  func.func @transform_3(%arg0: i32, %arg1: i32) -> (i32, i32, i32) {
    %c0_i32 = arith.constant 0 : i32
    %c0_i32_0 = arith.constant 0 : i32
    %c0_i32_1 = arith.constant 0 : i32
    return %arg0, %c0_i32, %c0_i32_0 : i32, i32, i32
  }
  func.func @transform_4(%arg0: i32, %arg1: i32) -> (i32, i32, i32) {
    %c0_i32 = arith.constant 0 : i32
    %c0_i32_0 = arith.constant 0 : i32
    %c0_i32_1 = arith.constant 0 : i32
    return %arg0, %c0_i32, %c0_i32_0 : i32, i32, i32
  }
}

</mosaic_0001>

<bundles_post_ra>
// kernel: tpu_custom_call.1
= control target key start
LH: loop header
LB: loop body
LE: loop exit
PB: predicated region body
PF: predicated region fallthrough
CT: control target
= control target key end

     0   :  { %10 = vsyncpa [#allocation5], 0  ;;  %vm27_vm0 = vcmask 261120   ;;  %s251_s0 = inlined_call_operand.vmem [shape: f32[8,32], index: 0, kind: input, shape index: {}]   ;;  %s252_s1 = inlined_call_operand.vmem [shape: f32[8,1], index: 1, kind: input, shape index: {}]   ;;  %s253_s2 = inlined_call_operand.vmem [shape: f32[8,1], index: 2, kind: input, shape index: {}]   ;;  %s254_s3 = inlined_call_operand.hbm [shape: f32[1,8,128], index: 3, kind: output, shape index: {0}]   ;;  %s255_s4 = inlined_call_operand.hbm [shape: f32[1,8,128], index: 4, kind: output, shape index: {1}]  }
   0x1   :  { %v25_v0 = vld [vmem:[%s251_s0] sm:$0xff] }
   0x2   :  { %11 = vsyncpa [#allocation7], 0  ;;  %v28_v1 = vsel %vm27_vm0, %v25_v0, -inf  ;;  %vm22_vm1 = vcmask 7168   ;;  %v180_v2 = vmov -inf   ;;  %v181_v3 = vmov 0  }
   0x3   :  { %29 = vmax.xlane.f32.xlu0 %v28_v1  ;;  %23 = vst.msk [vmem:[#allocation2] sm:$0xff] %vm22_vm1, %v180_v2  ;;  %v182_v4 = vmov 0.0   ;;  %v61_v24 = vld [vmem:[%s252_s1] sm:$0xff]  ;;  %s183_s1 = smov [#allocation4]   ;;  %s184_s21 = smov [#allocation6]  }
   0x4   :  { %125 = vset.pattern.permute.xlu0 %v181_v3  ;;  %24 = vst.msk [vmem:[#allocation3] sm:$0xff] %vm22_vm1, %v182_v4  ;;  %v60_v26 = vld [vmem:[%s253_s2] sm:$0xff]  ;;  %s94_s2 = sshll.u32 %s183_s1, 4  ;;  %s104_s22 = sshll.u32 %s184_s21, 4  ;;  %s95_s2 = int_to_ptr.vmem [resolvable:$true] %s94_s2  ;;  %s105_s22 = int_to_ptr.vmem [resolvable:$true] %s104_s22 }
   0x5   :  { %v76_v30 = vsel %vm22_vm1, %v60_v26, 0.0  ;;  %s132_s23 = scalar_lea.vmem %s95_s2, 128  ;;  %p137_p1 = scmp.lt.s32.totalorder %s95_s2, %s95_s2 }
   0x6   :  { %p133_p0 = scmp.ne.s32.totalorder %s95_s2, %s132_s23  ;;  %p138_p2 = scmp.lt.s32.totalorder %s132_s23, %s132_s23 }
   0x8   :  { %p139_p3 = por %p138_p2, %p137_p1 }
   0xa   :  { %v26_v5 = vld [vmem:[#allocation2] sm:$0xff]  ;;  %p140_p4 = pnand %p139_p3, %p133_p0 }
   0xb   :  { %v35_v16 = vld [vmem:[#allocation3] sm:$0xff] }
  0x90   :  { %v30_v6 = vpop.xlane.xlu0 %29 }
  0x91   :  { %v31_v7 = vmax.f32 %v26_v5, %v30_v6 }
  0x93   :  { %v32_v8 = vsub.f32 %v26_v5, %v31_v7  ;;  %51 = vst.msk [vmem:[#allocation2] sm:$0xff] %vm22_vm1, %v31_v7  ;;  %39 = vperm.xlu0 %125, %v31_v7  }
  0x95   :  { %v33_v14 = vmul.f32 1.442695, %v32_v8 }
  0x9a   :  { %v55_v23 = vld [vmem:[#allocation2] sm:$0xff] }
 0x112   :  { %v40_v9 = vpop.permute.xlu0 %39 }
 0x113   :  { %v42_v10 = vsub.f32 %v25_v0, %v40_v9 }
 0x115   :  { %v43_v11 = vmul.f32 1.442695, %v42_v10 }
 0x117   :  { %126 = vpow2.f32 %v43_v11 }
 0x118   :  { %128 = vpow2.f32 %v33_v14 }
 0x121   :  { %v127_v12 = vpop.eup %126 }
 0x122   :  { %v45_v13 = vsel %vm27_vm0, %v127_v12, 0.0  ;;  %v129_v15 = vpop.eup %128 }
 0x123   :  { %46 = vadd.xlane.f32.xlu1 %v45_v13  ;;  %v36_v17 = vmul.f32 %v129_v15, %v35_v16 }
 0x1b0   :  { %v47_v18 = vpop.xlane.xlu1 %46 }
 0x1b1   :  { %v48_v19 = vadd.f32 %v47_v18, %v36_v17 }
 0x1b3   :  { %50 = vst.msk [vmem:[#allocation3] sm:$0xff] %vm22_vm1, %v48_v19 }
 0x1ba   :  { %v56_v20 = vld [vmem:[#allocation3] sm:$0xff] }
 0x1bb   :  { %130 = vlog2.f32 %v56_v20 }
 0x1c5   :  { %v131_v21 = vpop.eup %130 }
 0x1c6   :  { %v58_v22 = vmul.f32 0.6931472, %v131_v21 }
 0x1c8   :  { %v59_v25 = vadd.f32 %v58_v22, %v55_v23 }
 0x1ca   :  { %v62_v27 = vsub.f32 %v59_v25, %v61_v24 }
 0x1cc   :  { %v63_v28 = vmul.f32 %v62_v27, %v60_v26 }
 0x1ce   :  { %v64_v29 = vsel %vm22_vm1, %v63_v28, 0.0 }
 0x1cf   :  { %65 = vadd.xlane.f32.xlu1 %v64_v29 }
 0x1d3   :  { %77 = vadd.xlane.f32.xlu1 %v76_v30 }
 0x25c   :  { %v66_v31 = vpop.xlane.xlu1 %65 }
 0x25d   :  { %v67_v32 = vrot.slane %v66_v31, 4 }
 0x25f   :  { %v68_v33 = vadd.f32 %v67_v32, %v66_v31 }
 0x260   :  { %v78_v34 = vpop.xlane.xlu1 %77 }
 0x261   :  { %v69_v35 = vrot.slane %v68_v33, 2  ;;  %v79_v36 = vrot.slane %v78_v34, 4 }
 0x263   :  { %v80_v37 = vadd.f32 %v79_v36, %v78_v34  ;;  %v70_v38 = vadd.f32 %v69_v35, %v68_v33 }
 0x265   :  { %v81_v39 = vrot.slane %v80_v37, 2  ;;  %v71_v40 = vrot.slane %v70_v38, 1 }
 0x267   :  { %v82_v41 = vadd.f32 %v81_v39, %v80_v37  ;;  %v72_v42 = vadd.f32 %v71_v40, %v70_v38 }
 0x269   :  { %116 = vpush %v72_v42  ;;  %v83_v43 = vrot.slane %v82_v41, 1 }
 0x26b   :  { %v84_v44 = vadd.f32 %v83_v43, %v82_v41 }
 0x26d   :  { %118 = vpush %v84_v44 }
 0x29a   :  { %s117_s20 = spop %116 }
 0x29b   :  { %v74_v45 = vstv %s117_s20 }
 0x29c   :  { %75 = vst [vmem:[#allocation4] sm:$0xff] %v74_v45 }
 0x29d   :  { %143 = shalt.err (!%p140_p4)
}
 0x29e   :  { %s144_s26 = scalar_lea.hbm %s254_s3, 128 }
 0x29f   :  { %p145_p5 = scmp.ne.s32.totalorder %s254_s3, %s144_s26  ;;  %p148_p6 = scmp.lt.u32.totalorder %s144_s26, %s254_s3 }
 0x2a1   :  { %p150_p7 = pnand %p148_p6, %p145_p5 }
 0x2a3   :  { %153 = shalt.err (!%p150_p7)
}
 0x2a4   :  { %97 = dma.vmem_to_hbm [thread:$0]  %s95_s2, 128, %s254_s3, [#allocation5]  }
 0x2a5   :  { %s119_s7 = spop %118  ;;  %s154_s8 = scalar_lea.vmem %s105_s22, 128 }
 0x2a6   :  { %v86_v46 = vstv %s119_s7  ;;  %p155_p8 = scmp.ne.s32.totalorder %s105_s22, %s154_s8  ;;  %p159_p9 = scmp.lt.s32.totalorder %s105_s22, %s105_s22 }
 0x2a7   :  { %87 = vst [vmem:[#allocation6] sm:$0xff] %v86_v46  ;;  %p160_p10 = scmp.lt.s32.totalorder %s154_s8, %s154_s8 }
 0x2a9   :  { %p161_p11 = por %p160_p10, %p159_p9 }
 0x2ab   :  { %p162_p12 = pnand %p161_p11, %p155_p8 }
 0x2ad   :  { %165 = shalt.err (!%p162_p12)
}
 0x2ae   :  { %s166_s11 = scalar_lea.hbm %s255_s4, 128 }
 0x2af   :  { %p167_p13 = scmp.ne.s32.totalorder %s255_s4, %s166_s11  ;;  %p170_p0 = scmp.lt.u32.totalorder %s166_s11, %s255_s4 }
 0x2b1   :  { %p172_p1 = pnand %p170_p0, %p167_p13 }
 0x2b3   :  { %175 = shalt.err (!%p172_p1)
}
 0x2b4   :  { %107 = dma.vmem_to_hbm [thread:$0]  %s105_s22, 128, %s255_s4, [#allocation7]  }
 0x2b5   :  { %176 = dma.done.wait [#allocation5], 128  }
 0x2b6   :  { %177 = vsyncadd [#allocation5], 4294967168 }
 0x2b7   :  { %178 = dma.done.wait [#allocation7], 128  }
 0x2b8   :  { %179 = vsyncadd [#allocation7], 4294967168 }
 0x2b9   :  { %114 = vsyncpa [#allocation5], 1 }
 0x2ba   :  { %115 = vsyncpa [#allocation7], 1 }

</bundles_post_ra>
